<compile_context>
chip_gen: v6e
topology: v6e:2x2x1
jax: 0.10.0
libtpu: 0.0.40
codegen_flags: <defaults>
</compile_context>

<pallas_src>
import jax
import jax.numpy as jnp
from jax.experimental import pallas as pl
from jax.experimental.pallas import tpu as pltpu


def _make_toeplitz_copy_kernel(seq_length: int, tile_rows: int):
    S = seq_length
    TI = tile_rows

    def kernel(strip_ref, o_ref):
        # strip_ref: (2S-1, H) resident in VMEM.
        # o_ref:     (TI*S, H) block of the flat (S*S, H) output.
        i0 = pl.program_id(0) * TI          # first query row of this tile

        def body(r, carry):
            # Clamp so a partial last tile just re-writes the final valid row
            # into the out-of-bounds block region (discarded on writeback).
            i = jnp.minimum(i0 + r, S - 1)
            src = (S - 1) - i               # strip window start for row i
            dst = r * S                     # row-i segment inside this block
            if S % 8 == 0:
                dst = pl.multiple_of(dst, 8)   # aligned sublane store
            o_ref[pl.ds(dst, S), :] = strip_ref[pl.ds(src, S), :]
            return carry

        jax.lax.fori_loop(0, TI, body, None, unroll=TI <= 16)

    return kernel


def _choose_tile_rows(S: int, H: int, itemsize: int, vmem_budget_bytes: int) -> int:
    """Largest row tile whose double-buffered output block fits the budget."""
    row_bytes = S * H * itemsize            # one query row's (S, H) slab
    rows = int(max(1, vmem_budget_bytes // (2 * row_bytes)))
    if rows >= S:
        return S
    if S % 8 == 0:                          # (TI*S) % 8 == 0 for any TI
        return min(rows, S)
    ti = (rows // 8) * 8                    # keep second-minor block dim % 8 == 0
    return min(ti, S) if ti >= 8 else S


def relative_position_embedding(weight: jax.Array,
                                seq_length: int,
                                max_relative_position: int,
                                *,
                                tile_rows: int | None = None,
                                vmem_budget_bytes: int = 8 << 20) -> jax.Array:
    """weight: (2*max_relative_position+1, hidden). Returns (S, S, hidden)."""
    vocab, hidden = weight.shape
    assert vocab == 2 * max_relative_position + 1
    S, H = int(seq_length), int(hidden)
    itemsize = jnp.dtype(weight.dtype).itemsize

    # Toeplitz strip: O(S*H), negligible next to the O(S^2*H) kernel output.
    k = jnp.arange(2 * S - 1, dtype=jnp.int32)
    idx = jnp.clip(k - (S - 1), -max_relative_position, max_relative_position)
    idx = idx + max_relative_position
    strip = jnp.take(weight, idx, axis=0)                   # (2S-1, H)

    if tile_rows is None:
        tile_rows = _choose_tile_rows(S, H, itemsize, vmem_budget_bytes)
    TI = int(tile_rows)
    assert 1 <= TI <= S

    out_flat = pl.pallas_call(
        _make_toeplitz_copy_kernel(S, TI),
        out_shape=jax.ShapeDtypeStruct((S * S, H), weight.dtype),
        grid_spec=pltpu.PrefetchScalarGridSpec(
            num_scalar_prefetch=0,
            grid=(pl.cdiv(S, TI),),
            in_specs=[
                # Full strip resident every step (constant block index => no re-DMA).
                pl.BlockSpec((2 * S - 1, H), lambda b: (0, 0)),
            ],
            out_specs=pl.BlockSpec((TI * S, H), lambda b: (b, 0)),
        ),
        compiler_params=pltpu.CompilerParams(
            dimension_semantics=("parallel",),
            vmem_limit_bytes=32 * 1024 * 1024,
        ),
    )(strip)

    # Free metadata reshape back to the module's (S, S, H) layout.
    return out_flat.reshape(S, S, H)


def reference(weight: jax.Array, seq_length: int, max_rel: int) -> jax.Array:
    r = jnp.arange(seq_length)
    dist = r[None, :] - r[:, None]                          # (S, S): j - i
    idx = jnp.clip(dist, -max_rel, max_rel) + max_rel
    return weight[idx]                                      # (S, S, H)


if __name__ == "__main__":
    hidden_size = 32
    max_relative_position = 4
    seq_length = 8

    vocab = 2 * max_relative_position + 1
    key = jax.random.PRNGKey(0)
    # nn.Embedding default init: N(0, 1)
    weight = jax.random.normal(key, (vocab, hidden_size), dtype=jnp.float32)

    ref = reference(weight, seq_length, max_relative_position)

    # Auto tile size (single grid step at this small shape).
    out = relative_position_embedding(weight, seq_length, max_relative_position)
    out = jax.block_until_ready(out)
    assert out.shape == (seq_length, seq_length, hidden_size)
    assert jnp.allclose(out, ref, atol=1e-6, rtol=1e-6)

    # Exercise the multi-step, row-tiled path (grid of 2) as well.
    out2 = relative_position_embedding(weight, seq_length, max_relative_position,
                                       tile_rows=4)
    out2 = jax.block_until_ready(out2)
    assert jnp.allclose(out2, ref, atol=1e-6, rtol=1e-6)

    print("KERNEL_OK")
</pallas_src>

<mosaic_0001>
module attributes {stable_mosaic.version = 11 : i64} {
  func.func @kernel(%arg0: i32, %arg1: memref<15x32xf32, #tpu.memory_space<vmem>>, %arg2: memref<64x32xf32, #tpu.memory_space<vmem>>) attributes {dimension_semantics = [#tpu.dimension_semantics<parallel>], iteration_bounds = array<i64: 1>, scalar_prefetch = 0 : i64, scratch_operands = 0 : i64, tpu.core_type = #tpu.core_type<tc>, window_params = [{pipeline_mode = #tpu.pipeline_mode<synchronous>, transform_indices = @transform_0, window_bounds = array<i64: 15, 32>}, {transform_indices = @transform_1, window_bounds = array<i64: 64, 32>}]} {
    %c8_i32 = arith.constant 8 : i32
    %0 = arith.muli %arg0, %c8_i32 : i32
    %c0_i32 = arith.constant 0 : i32
    %1 = arith.addi %0, %c0_i32 : i32
    %c7_i32 = arith.constant 7 : i32
    %2 = arith.minsi %1, %c7_i32 : i32
    %c7_i32_0 = arith.constant 7 : i32
    %3 = arith.subi %c7_i32_0, %2 : i32
    %c8_i32_1 = arith.constant 8 : i32
    %4 = arith.muli %c0_i32, %c8_i32_1 : i32
    %5 = tpu.assume_multiple %4, 8 : i32
    %6 = arith.index_cast %3 : i32 to index
    %c0 = arith.constant 0 : index
    %7 = vector.load %arg1[%6, %c0] : memref<15x32xf32, #tpu.memory_space<vmem>>, vector<8x32xf32>
    %8 = arith.index_cast %5 : i32 to index
    %c0_2 = arith.constant 0 : index
    %9 = vector.load %arg2[%8, %c0_2] : memref<64x32xf32, #tpu.memory_space<vmem>>, vector<8x32xf32>
    tpu.vector_store %arg2[%8, %c0_2], %7 {strides = array<i32>} : memref<64x32xf32, #tpu.memory_space<vmem>>, vector<8x32xf32>,
    %c1_i32 = arith.constant 1 : i32
    %10 = arith.addi %0, %c1_i32 : i32
    %c7_i32_3 = arith.constant 7 : i32
    %11 = arith.minsi %10, %c7_i32_3 : i32
    %c7_i32_4 = arith.constant 7 : i32
    %12 = arith.subi %c7_i32_4, %11 : i32
    %c8_i32_5 = arith.constant 8 : i32
    %13 = arith.muli %c1_i32, %c8_i32_5 : i32
    %14 = tpu.assume_multiple %13, 8 : i32
    %15 = arith.index_cast %12 : i32 to index
    %c0_6 = arith.constant 0 : index
    %16 = vector.load %arg1[%15, %c0_6] : memref<15x32xf32, #tpu.memory_space<vmem>>, vector<8x32xf32>
    %17 = arith.index_cast %14 : i32 to index
    %c0_7 = arith.constant 0 : index
    %18 = vector.load %arg2[%17, %c0_7] : memref<64x32xf32, #tpu.memory_space<vmem>>, vector<8x32xf32>
    tpu.vector_store %arg2[%17, %c0_7], %16 {strides = array<i32>} : memref<64x32xf32, #tpu.memory_space<vmem>>, vector<8x32xf32>,
    %c2_i32 = arith.constant 2 : i32
    %19 = arith.addi %0, %c2_i32 : i32
    %c7_i32_8 = arith.constant 7 : i32
    %20 = arith.minsi %19, %c7_i32_8 : i32
    %c7_i32_9 = arith.constant 7 : i32
    %21 = arith.subi %c7_i32_9, %20 : i32
    %c8_i32_10 = arith.constant 8 : i32
    %22 = arith.muli %c2_i32, %c8_i32_10 : i32
    %23 = tpu.assume_multiple %22, 8 : i32
    %24 = arith.index_cast %21 : i32 to index
    %c0_11 = arith.constant 0 : index
    %25 = vector.load %arg1[%24, %c0_11] : memref<15x32xf32, #tpu.memory_space<vmem>>, vector<8x32xf32>
    %26 = arith.index_cast %23 : i32 to index
    %c0_12 = arith.constant 0 : index
    %27 = vector.load %arg2[%26, %c0_12] : memref<64x32xf32, #tpu.memory_space<vmem>>, vector<8x32xf32>
    tpu.vector_store %arg2[%26, %c0_12], %25 {strides = array<i32>} : memref<64x32xf32, #tpu.memory_space<vmem>>, vector<8x32xf32>,
    %c3_i32 = arith.constant 3 : i32
    %28 = arith.addi %0, %c3_i32 : i32
    %c7_i32_13 = arith.constant 7 : i32
    %29 = arith.minsi %28, %c7_i32_13 : i32
    %c7_i32_14 = arith.constant 7 : i32
    %30 = arith.subi %c7_i32_14, %29 : i32
    %c8_i32_15 = arith.constant 8 : i32
    %31 = arith.muli %c3_i32, %c8_i32_15 : i32
    %32 = tpu.assume_multiple %31, 8 : i32
    %33 = arith.index_cast %30 : i32 to index
    %c0_16 = arith.constant 0 : index
    %34 = vector.load %arg1[%33, %c0_16] : memref<15x32xf32, #tpu.memory_space<vmem>>, vector<8x32xf32>
    %35 = arith.index_cast %32 : i32 to index
    %c0_17 = arith.constant 0 : index
    %36 = vector.load %arg2[%35, %c0_17] : memref<64x32xf32, #tpu.memory_space<vmem>>, vector<8x32xf32>
    tpu.vector_store %arg2[%35, %c0_17], %34 {strides = array<i32>} : memref<64x32xf32, #tpu.memory_space<vmem>>, vector<8x32xf32>,
    %c4_i32 = arith.constant 4 : i32
    %37 = arith.addi %0, %c4_i32 : i32
    %c7_i32_18 = arith.constant 7 : i32
    %38 = arith.minsi %37, %c7_i32_18 : i32
    %c7_i32_19 = arith.constant 7 : i32
    %39 = arith.subi %c7_i32_19, %38 : i32
    %c8_i32_20 = arith.constant 8 : i32
    %40 = arith.muli %c4_i32, %c8_i32_20 : i32
    %41 = tpu.assume_multiple %40, 8 : i32
    %42 = arith.index_cast %39 : i32 to index
    %c0_21 = arith.constant 0 : index
    %43 = vector.load %arg1[%42, %c0_21] : memref<15x32xf32, #tpu.memory_space<vmem>>, vector<8x32xf32>
    %44 = arith.index_cast %41 : i32 to index
    %c0_22 = arith.constant 0 : index
    %45 = vector.load %arg2[%44, %c0_22] : memref<64x32xf32, #tpu.memory_space<vmem>>, vector<8x32xf32>
    tpu.vector_store %arg2[%44, %c0_22], %43 {strides = array<i32>} : memref<64x32xf32, #tpu.memory_space<vmem>>, vector<8x32xf32>,
    %c5_i32 = arith.constant 5 : i32
    %46 = arith.addi %0, %c5_i32 : i32
    %c7_i32_23 = arith.constant 7 : i32
    %47 = arith.minsi %46, %c7_i32_23 : i32
    %c7_i32_24 = arith.constant 7 : i32
    %48 = arith.subi %c7_i32_24, %47 : i32
    %c8_i32_25 = arith.constant 8 : i32
    %49 = arith.muli %c5_i32, %c8_i32_25 : i32
    %50 = tpu.assume_multiple %49, 8 : i32
    %51 = arith.index_cast %48 : i32 to index
    %c0_26 = arith.constant 0 : index
    %52 = vector.load %arg1[%51, %c0_26] : memref<15x32xf32, #tpu.memory_space<vmem>>, vector<8x32xf32>
    %53 = arith.index_cast %50 : i32 to index
    %c0_27 = arith.constant 0 : index
    %54 = vector.load %arg2[%53, %c0_27] : memref<64x32xf32, #tpu.memory_space<vmem>>, vector<8x32xf32>
    tpu.vector_store %arg2[%53, %c0_27], %52 {strides = array<i32>} : memref<64x32xf32, #tpu.memory_space<vmem>>, vector<8x32xf32>,
    %c6_i32 = arith.constant 6 : i32
    %55 = arith.addi %0, %c6_i32 : i32
    %c7_i32_28 = arith.constant 7 : i32
    %56 = arith.minsi %55, %c7_i32_28 : i32
    %c7_i32_29 = arith.constant 7 : i32
    %57 = arith.subi %c7_i32_29, %56 : i32
    %c8_i32_30 = arith.constant 8 : i32
    %58 = arith.muli %c6_i32, %c8_i32_30 : i32
    %59 = tpu.assume_multiple %58, 8 : i32
    %60 = arith.index_cast %57 : i32 to index
    %c0_31 = arith.constant 0 : index
    %61 = vector.load %arg1[%60, %c0_31] : memref<15x32xf32, #tpu.memory_space<vmem>>, vector<8x32xf32>
    %62 = arith.index_cast %59 : i32 to index
    %c0_32 = arith.constant 0 : index
    %63 = vector.load %arg2[%62, %c0_32] : memref<64x32xf32, #tpu.memory_space<vmem>>, vector<8x32xf32>
    tpu.vector_store %arg2[%62, %c0_32], %61 {strides = array<i32>} : memref<64x32xf32, #tpu.memory_space<vmem>>, vector<8x32xf32>,
    %c7_i32_33 = arith.constant 7 : i32
    %64 = arith.addi %0, %c7_i32_33 : i32
    %c7_i32_34 = arith.constant 7 : i32
    %65 = arith.minsi %64, %c7_i32_34 : i32
    %c7_i32_35 = arith.constant 7 : i32
    %66 = arith.subi %c7_i32_35, %65 : i32
    %c8_i32_36 = arith.constant 8 : i32
    %67 = arith.muli %c7_i32_33, %c8_i32_36 : i32
    %68 = tpu.assume_multiple %67, 8 : i32
    %69 = arith.index_cast %66 : i32 to index
    %c0_37 = arith.constant 0 : index
    %70 = vector.load %arg1[%69, %c0_37] : memref<15x32xf32, #tpu.memory_space<vmem>>, vector<8x32xf32>
    %71 = arith.index_cast %68 : i32 to index
    %c0_38 = arith.constant 0 : index
    %72 = vector.load %arg2[%71, %c0_38] : memref<64x32xf32, #tpu.memory_space<vmem>>, vector<8x32xf32>
    tpu.vector_store %arg2[%71, %c0_38], %70 {strides = array<i32>} : memref<64x32xf32, #tpu.memory_space<vmem>>, vector<8x32xf32>,
    %c8_i32_39 = arith.constant 8 : i32
    return
  }
  func.func @transform_0(%arg0: i32) -> (i32, i32) {
    %c0_i32 = arith.constant 0 : i32
    %c0_i32_0 = arith.constant 0 : i32
    %c0_i32_1 = arith.constant 0 : i32
    return %c0_i32, %c0_i32_0 : i32, i32
  }
  func.func @transform_1(%arg0: i32) -> (i32, i32) {
    %c0_i32 = arith.constant 0 : i32
    %c0_i32_0 = arith.constant 0 : i32
    return %arg0, %c0_i32 : i32, i32
  }
}

</mosaic_0001>

<bundles_post_ra>
// kernel: tpu_custom_call.1
= control target key start
LH: loop header
LB: loop body
LE: loop exit
PB: predicated region body
PF: predicated region fallthrough
CT: control target
= control target key end

     0   :  { %6 = vsyncpa [#allocation3], 0  ;;  %s131_s6 = smov [#allocation2]   ;;  %s179_s0 = inlined_call_operand.hbm [shape: f32[15,32], index: 0, kind: input, shape index: {}]   ;;  %s180_s1 = inlined_call_operand.vmem [shape: f32[64,32], index: 1, kind: output, shape index: {}]  }
   0x1   :  { %s12_s7 = sshll.u32 %s131_s6, 4  ;;  %s13_s7 = int_to_ptr.vmem [resolvable:$true] %s12_s7 }
   0x2   :  { %s117_s8 = scalar_lea.vmem %s13_s7, 256  ;;  %p122_p1 = scmp.lt.s32.totalorder %s13_s7, %s13_s7 }
   0x3   :  { %p118_p0 = scmp.ne.s32.totalorder %s13_s7, %s117_s8  ;;  %p123_p2 = scmp.lt.s32.totalorder %s117_s8, %s117_s8 }
   0x5   :  { %p124_p3 = por %p123_p2, %p122_p1 }
   0x7   :  { %p125_p4 = pnand %p124_p3, %p118_p0 }
   0x9   :  { %128 = shalt.err (!%p125_p4)
}
   0xa   :  { %s132_s9 = smov 128   ;;  %s133_s10 = smov 8  }
   0xb   :  { %18 = dma.hbm_to_vmem [thread:$0]  %s179_s0, 256, %s13_s7, [#allocation3], %s132_s9, %s132_s9, %s133_s10  }
   0xc   :  { %129 = dma.done.wait [#allocation3], 256  }
   0xd   :  { %130 = vsyncadd [#allocation3], 4294967040  ;;  %vm28_vm0 = vcmask 261120   ;;  %v27_v0 = vld [vmem:[#allocation2 + $0x7] sm:$0xff] }
   0xe   :  { %v35_v1 = vld [vmem:[#allocation2 + $0x6] sm:$0xff]  ;;  %29 = vst.msk [vmem:[%s180_s1] sm:$0xff] %vm28_vm0, %v27_v0 }
   0xf   :  { %v43_v2 = vld [vmem:[#allocation2 + $0x5] sm:$0xff]  ;;  %99 = vst.msk [vmem:[%s180_s1 + $0x8] sm:$0xff] %vm28_vm0, %v35_v1 }
  0x10   :  { %100 = vst.msk [vmem:[%s180_s1 + $0x10] sm:$0xff] %vm28_vm0, %v43_v2  ;;  %v51_v3 = vld [vmem:[#allocation2 + $0x4] sm:$0xff] }
  0x11   :  { %v59_v4 = vld [vmem:[#allocation2 + $0x3] sm:$0xff]  ;;  %101 = vst.msk [vmem:[%s180_s1 + $0x18] sm:$0xff] %vm28_vm0, %v51_v3 }
  0x12   :  { %v67_v5 = vld [vmem:[#allocation2 + $0x2] sm:$0xff]  ;;  %102 = vst.msk [vmem:[%s180_s1 + $0x20] sm:$0xff] %vm28_vm0, %v59_v4 }
  0x13   :  { %103 = vst.msk [vmem:[%s180_s1 + $0x28] sm:$0xff] %vm28_vm0, %v67_v5  ;;  %v75_v6 = vld [vmem:[#allocation2 + $0x1] sm:$0xff] }
  0x14   :  { %v83_v7 = vld [vmem:[#allocation2] sm:$0xff]  ;;  %104 = vst.msk [vmem:[%s180_s1 + $0x30] sm:$0xff] %vm28_vm0, %v75_v6 }
  0x15   :  { %105 = vst.msk [vmem:[%s180_s1 + $0x38] sm:$0xff] %vm28_vm0, %v83_v7 }
  0x16   :  { %90 = vsyncpa [#allocation3], 1 }

</bundles_post_ra>
